<compile_context>
chip_gen: v5e
topology: v5e:2x2
jax: 0.10.0
libtpu: 0.0.40
codegen_flags: <defaults>
</compile_context>

<pallas_src>
import functools

import jax
import jax.numpy as jnp
from jax.experimental import pallas as pl
from jax.experimental.pallas import tpu as pltpu


def _add_norm_kernel(x_ref, y_ref, o_ref, *, eps: float):
    # Block layout: (TR, D) -- rows on sublanes, features (D) on lanes.
    # dropout(p=0) is identity, so z = y + x.
    z = (y_ref[...] + x_ref[...]).astype(jnp.float32)   # f32 accumulation
    d = z.shape[-1]
    mean = jnp.sum(z, axis=-1, keepdims=True) * (1.0 / d)
    c = z - mean
    # Two-pass (numerically safe) unbiased variance: sum((z-mean)^2) / (D-1).
    var = jnp.sum(c * c, axis=-1, keepdims=True) * (1.0 / (d - 1))
    inv = jax.lax.rsqrt(var + eps)                       # EUP slot, ~free
    o_ref[...] = (c * inv).astype(o_ref.dtype)


# (16384, 24) f32 block = 1.5 MiB; 3 operands x 2 buffers = 9 MiB
# -> fits the v5e 16 MiB scoped-VMEM default; far under v6e/v7x budgets.
_MAX_ROW_TILE = 16384
# Below this, launch/DMA-setup overhead dominates -> single full-extent block.
_SINGLE_TILE_ROWS = 4096


def add_norm(x: jax.Array, y: jax.Array, eps: float = 1e-5) -> jax.Array:
    assert x.shape == y.shape and x.dtype == y.dtype
    *lead, d = x.shape
    rows = 1
    for s in lead:
        rows *= s

    # Natural layout: free contiguous reshape, no transpose / extra HBM pass.
    x2 = x.reshape(rows, d)
    y2 = y.reshape(rows, d)

    if rows <= _SINGLE_TILE_ROWS:
        tr = rows                      # full-extent block along rows (legal)
    else:
        # Balanced row tiles, >=2 so v7x's two TensorCores both engage;
        # multiple of 8 to satisfy the sublane constraint.
        n_tiles = max(2, pl.cdiv(rows, _MAX_ROW_TILE))
        tr = ((pl.cdiv(rows, n_tiles) + 7) // 8) * 8

    grid = (pl.cdiv(rows, tr),)
    kernel = functools.partial(_add_norm_kernel, eps=eps)

    out2 = pl.pallas_call(
        kernel,
        out_shape=jax.ShapeDtypeStruct((rows, d), x.dtype),
        grid=grid,
        in_specs=[
            pl.BlockSpec((tr, d), lambda i: (i, 0)),
            pl.BlockSpec((tr, d), lambda i: (i, 0)),
        ],
        out_specs=pl.BlockSpec((tr, d), lambda i: (i, 0)),
        compiler_params=pltpu.CompilerParams(
            dimension_semantics=("parallel",),
        ),
    )(x2, y2)

    return out2.reshape(x.shape)


def add_norm_ref(x, y, eps=1e-5):
    z = y + x
    mean = jnp.mean(z, axis=-1, keepdims=True)
    var = jnp.sum((z - mean) ** 2, axis=-1, keepdims=True) / (z.shape[-1] - 1)
    return (z - mean) / jnp.sqrt(var + eps)


if __name__ == "__main__":
    key = jax.random.PRNGKey(0)
    kx, ky = jax.random.split(key)
    # Shapes consistent with the module: (2, 100, 24), dropout=0
    X = jax.random.normal(kx, (2, 100, 24), dtype=jnp.float32)
    Y = jax.random.normal(ky, (2, 100, 24), dtype=jnp.float32)

    out = add_norm(X, Y)
    jax.block_until_ready(out)

    ref = add_norm_ref(X, Y)
    assert out.shape == (2, 100, 24) and out.dtype == jnp.float32
    assert jnp.allclose(out, ref, atol=1e-5, rtol=1e-5), float(
        jnp.max(jnp.abs(out - ref))
    )

    print("KERNEL_OK")
</pallas_src>

<mosaic_0001>
module attributes {stable_mosaic.version = 11 : i64} {
  func.func @_add_norm_kernel(%arg0: i32, %arg1: memref<200x24xf32, #tpu.memory_space<vmem>>, %arg2: memref<200x24xf32, #tpu.memory_space<vmem>>, %arg3: memref<200x24xf32, #tpu.memory_space<vmem>>) attributes {dimension_semantics = [#tpu.dimension_semantics<parallel>], iteration_bounds = array<i64: 1>, scalar_prefetch = 0 : i64, scratch_operands = 0 : i64, tpu.core_type = #tpu.core_type<tc>, window_params = [{transform_indices = @transform_0, window_bounds = array<i64: 200, 24>}, {transform_indices = @transform_1, window_bounds = array<i64: 200, 24>}, {transform_indices = @transform_2, window_bounds = array<i64: 200, 24>}]} {
    %c0 = arith.constant 0 : index
    %c0_0 = arith.constant 0 : index
    %0 = vector.load %arg2[%c0, %c0_0] : memref<200x24xf32, #tpu.memory_space<vmem>>, vector<200x24xf32>
    %c0_1 = arith.constant 0 : index
    %c0_2 = arith.constant 0 : index
    %1 = vector.load %arg1[%c0_1, %c0_2] : memref<200x24xf32, #tpu.memory_space<vmem>>, vector<200x24xf32>
    %2 = arith.addf %0, %1 : vector<200x24xf32>
    %cst = arith.constant dense<0.000000e+00> : vector<200xf32>
    %3 = vector.multi_reduction <add>, %2, %cst [1] : vector<200x24xf32> to vector<200xf32>
    %4 = vector.shape_cast %3 : vector<200xf32> to vector<200x1xf32>
    %cst_3 = arith.constant 0.0416666679 : f32
    %5 = vector.broadcast %cst_3 : f32 to vector<200x1xf32>
    %6 = arith.mulf %4, %5 : vector<200x1xf32>
    %7 = vector.broadcast %6 : vector<200x1xf32> to vector<200x24xf32>
    %8 = arith.subf %2, %7 : vector<200x24xf32>
    %9 = arith.mulf %8, %8 : vector<200x24xf32>
    %cst_4 = arith.constant dense<0.000000e+00> : vector<200xf32>
    %10 = vector.multi_reduction <add>, %9, %cst_4 [1] : vector<200x24xf32> to vector<200xf32>
    %11 = vector.shape_cast %10 : vector<200xf32> to vector<200x1xf32>
    %cst_5 = arith.constant 0.0434782617 : f32
    %12 = vector.broadcast %cst_5 : f32 to vector<200x1xf32>
    %13 = arith.mulf %11, %12 : vector<200x1xf32>
    %cst_6 = arith.constant 9.99999974E-6 : f32
    %14 = vector.broadcast %cst_6 : f32 to vector<200x1xf32>
    %15 = arith.addf %13, %14 : vector<200x1xf32>
    %16 = math.rsqrt %15 : vector<200x1xf32>
    %17 = vector.broadcast %16 : vector<200x1xf32> to vector<200x24xf32>
    %18 = arith.mulf %8, %17 : vector<200x24xf32>
    %c0_7 = arith.constant 0 : index
    %c0_8 = arith.constant 0 : index
    %19 = vector.load %arg3[%c0_7, %c0_8] : memref<200x24xf32, #tpu.memory_space<vmem>>, vector<200x24xf32>
    tpu.vector_store %arg3[%c0_7, %c0_8], %18 {strides = array<i32>} : memref<200x24xf32, #tpu.memory_space<vmem>>, vector<200x24xf32>,
    return
  }
  func.func @transform_0(%arg0: i32) -> (i32, i32) {
    %c0_i32 = arith.constant 0 : i32
    %c0_i32_0 = arith.constant 0 : i32
    return %arg0, %c0_i32 : i32, i32
  }
  func.func @transform_1(%arg0: i32) -> (i32, i32) {
    %c0_i32 = arith.constant 0 : i32
    %c0_i32_0 = arith.constant 0 : i32
    return %arg0, %c0_i32 : i32, i32
  }
  func.func @transform_2(%arg0: i32) -> (i32, i32) {
    %c0_i32 = arith.constant 0 : i32
    %c0_i32_0 = arith.constant 0 : i32
    return %arg0, %c0_i32 : i32, i32
  }
}

</mosaic_0001>

<bundles_post_ra>
// kernel: tpu_custom_call.1
= control target key start
LH: loop header
LB: loop body
LE: loop exit
PB: predicated region body
PF: predicated region fallthrough
CT: control target
= control target key end

     0   :  { %vm86_vm0 = vcmask 195584   ;;  %s1526_s0 = inlined_call_operand.vmem [shape: f32[200,24], index: 0, kind: input, shape index: {}]   ;;  %s1527_s1 = inlined_call_operand.vmem [shape: f32[200,24], index: 1, kind: input, shape index: {}]   ;;  %s1528_s2 = inlined_call_operand.vmem [shape: f32[200,24], index: 2, kind: output, shape index: {}]  }
   0x1   :  { %v15_v0 = vld [vmem:[%s1527_s1 + $0x20] sm:$0xff]  ;;  %v13_v2 = vld [vmem:[%s1527_s1 + $0x10] sm:$0xff]  ;;  %v16_v9 = vld [vmem:[%s1527_s1 + $0x28] sm:$0xff] }
   0x2   :  { %v40_v1 = vld [vmem:[%s1526_s0 + $0x20] sm:$0xff]  ;;  %v38_v4 = vld [vmem:[%s1526_s0 + $0x10] sm:$0xff]  ;;  %v41_v10 = vld [vmem:[%s1526_s0 + $0x28] sm:$0xff] }
   0x3   :  { %v740_v3 = vadd.f32 %v40_v1, %v15_v0  ;;  %v11_v5 = vld [vmem:[%s1527_s1] sm:$0xff]  ;;  %v751_v7 = vadd.f32 %v38_v4, %v13_v2  ;;  %v14_v11 = vld [vmem:[%s1527_s1 + $0x18] sm:$0xff]  ;;  %v12_v14 = vld [vmem:[%s1527_s1 + $0x8] sm:$0xff]  ;;  %v779_v18 = vadd.f32 %v41_v10, %v16_v9 }
   0x4   :  { %v36_v6 = vld [vmem:[%s1526_s0] sm:$0xff]  ;;  %v39_v13 = vld [vmem:[%s1526_s0 + $0x18] sm:$0xff]  ;;  %v37_v15 = vld [vmem:[%s1526_s0 + $0x8] sm:$0xff] }
   0x5   :  { %v753_v8 = vadd.f32 %v36_v6, %v11_v5  ;;  %v99_v12 = vsel %vm86_vm0, %v740_v3, 0.0  ;;  %v93_v16 = vsel %vm86_vm0, %v751_v7, 0.0  ;;  %v781_v19 = vadd.f32 %v39_v13, %v14_v11  ;;  %v19_v24 = vld [vmem:[%s1527_s1 + $0x40] sm:$0xff]  ;;  %v17_v26 = vld [vmem:[%s1527_s1 + $0x30] sm:$0xff]  ;;  %v18_v28 = vld [vmem:[%s1527_s1 + $0x38] sm:$0xff] }
   0x6   :  { %100 = vadd.xlane.f32.xlu2 %v99_v12  ;;  %94 = vadd.xlane.f32.xlu1 %v93_v16  ;;  %v783_v20 = vadd.f32 %v37_v15, %v12_v14  ;;  %v102_v21 = vsel %vm86_vm0, %v779_v18, 0.0  ;;  %v44_v25 = vld [vmem:[%s1526_s0 + $0x40] sm:$0xff]  ;;  %v42_v27 = vld [vmem:[%s1526_s0 + $0x30] sm:$0xff]  ;;  %v43_v29 = vld [vmem:[%s1526_s0 + $0x38] sm:$0xff] }
   0x7   :  { %v87_v17 = vsel %vm86_vm0, %v753_v8, 0.0  ;;  %v96_v22 = vsel %vm86_vm0, %v781_v19, 0.0  ;;  %v809_v30 = vadd.f32 %v44_v25, %v19_v24  ;;  %v811_v31 = vadd.f32 %v42_v27, %v17_v26  ;;  %v22_v35 = vld [vmem:[%s1527_s1 + $0x58] sm:$0xff]  ;;  %v20_v38 = vld [vmem:[%s1527_s1 + $0x48] sm:$0xff]  ;;  %v21_v40 = vld [vmem:[%s1527_s1 + $0x50] sm:$0xff] }
   0x8   :  { %88 = vadd.xlane.f32.xlu0 %v87_v17  ;;  %v90_v23 = vsel %vm86_vm0, %v783_v20, 0.0  ;;  %v813_v32 = vadd.f32 %v43_v29, %v18_v28  ;;  %v47_v36 = vld [vmem:[%s1526_s0 + $0x58] sm:$0xff]  ;;  %v45_v39 = vld [vmem:[%s1526_s0 + $0x48] sm:$0xff]  ;;  %v46_v41 = vld [vmem:[%s1526_s0 + $0x50] sm:$0xff] }
   0x9   :  { %v111_v33 = vsel %vm86_vm0, %v809_v30, 0.0  ;;  %v105_v34 = vsel %vm86_vm0, %v811_v31, 0.0  ;;  %v839_v42 = vadd.f32 %v47_v36, %v22_v35  ;;  %v841_v43 = vadd.f32 %v45_v39, %v20_v38  ;;  %v25_v47 = vld [vmem:[%s1527_s1 + $0x70] sm:$0xff]  ;;  %v23_v50 = vld [vmem:[%s1527_s1 + $0x60] sm:$0xff]  ;;  %v24_v52 = vld [vmem:[%s1527_s1 + $0x68] sm:$0xff] }
   0xa   :  { %v108_v37 = vsel %vm86_vm0, %v813_v32, 0.0  ;;  %v843_v44 = vadd.f32 %v46_v41, %v21_v40  ;;  %v50_v48 = vld [vmem:[%s1526_s0 + $0x70] sm:$0xff]  ;;  %v48_v51 = vld [vmem:[%s1526_s0 + $0x60] sm:$0xff]  ;;  %v49_v53 = vld [vmem:[%s1526_s0 + $0x68] sm:$0xff] }
   0xb   :  { %v120_v45 = vsel %vm86_vm0, %v839_v42, 0.0  ;;  %v114_v46 = vsel %vm86_vm0, %v841_v43, 0.0  ;;  %v869_v54 = vadd.f32 %v50_v48, %v25_v47  ;;  %v35_v55 = vld [vmem:[%s1527_s1 + $0xc0] sm:$0xff]  ;;  %v874_v56 = vadd.f32 %v48_v51, %v23_v50  ;;  %v28_v62 = vld [vmem:[%s1527_s1 + $0x88] sm:$0xff]  ;;  %v26_v1 = vld [vmem:[%s1527_s1 + $0x78] sm:$0xff] }
   0xc   :  { %v117_v49 = vsel %vm86_vm0, %v843_v44, 0.0  ;;  %v876_v57 = vadd.f32 %v49_v53, %v24_v52  ;;  %v60_v58 = vld [vmem:[%s1526_s0 + $0xc0] sm:$0xff]  ;;  %v53_v63 = vld [vmem:[%s1526_s0 + $0x88] sm:$0xff]  ;;  %v51_v2 = vld [vmem:[%s1526_s0 + $0x78] sm:$0xff] }
   0xd   :  { %v881_v59 = vadd.f32 %v60_v58, %v35_v55  ;;  %v129_v60 = vsel %vm86_vm0, %v869_v54, 0.0  ;;  %v123_v61 = vsel %vm86_vm0, %v874_v56, 0.0  ;;  %v27_v4 = vld [vmem:[%s1527_s1 + $0x80] sm:$0xff]  ;;  %v907_v6 = vadd.f32 %v53_v63, %v28_v62  ;;  %v29_v16 = vld [vmem:[%s1527_s1 + $0x90] sm:$0xff]  ;;  %v34_v28 = vld [vmem:[%s1527_s1 + $0xb8] sm:$0xff] }
   0xe   :  { %103 = vadd.xlane.f32.xlu2 %v102_v21  ;;  %97 = vadd.xlane.f32.xlu1 %v96_v22  ;;  %v126_v0 = vsel %vm86_vm0, %v876_v57, 0.0  ;;  %v52_v5 = vld [vmem:[%s1526_s0 + $0x80] sm:$0xff]  ;;  %v909_v9 = vadd.f32 %v51_v2, %v26_v1  ;;  %v54_v17 = vld [vmem:[%s1526_s0 + $0x90] sm:$0xff]  ;;  %v30_v21 = vld [vmem:[%s1527_s1 + $0x98] sm:$0xff] }
   0xf   :  { %v911_v10 = vadd.f32 %v52_v5, %v27_v4  ;;  %v138_v11 = vsel %vm86_vm0, %v907_v6, 0.0  ;;  %v31_v13 = vld [vmem:[%s1527_s1 + $0xa0] sm:$0xff]  ;;  %v55_v22 = vld [vmem:[%s1526_s0 + $0x98] sm:$0xff]  ;;  %v939_v24 = vadd.f32 %v54_v17, %v29_v16  ;;  %v57_v35 = vld [vmem:[%s1526_s0 + $0xa8] sm:$0xff]  ;;  %v159_v47 = vsel %vm86_vm0, %v881_v59, 0.0 }
  0x10   :  { %91 = vadd.xlane.f32.xlu0 %v90_v23  ;;  %v132_v12 = vsel %vm86_vm0, %v909_v9, 0.0  ;;  %v56_v14 = vld [vmem:[%s1526_s0 + $0xa0] sm:$0xff]  ;;  %v941_v25 = vadd.f32 %v55_v22, %v30_v21  ;;  %v59_v29 = vld [vmem:[%s1526_s0 + $0xb8] sm:$0xff]  ;;  %v33_v36 = vld [vmem:[%s1527_s1 + $0xb0] sm:$0xff] }
  0x11   :  { %v135_v15 = vsel %vm86_vm0, %v911_v10, 0.0  ;;  %v937_v23 = vadd.f32 %v56_v14, %v31_v13  ;;  %v141_v27 = vsel %vm86_vm0, %v939_v24, 0.0  ;;  %v967_v38 = vadd.f32 %v59_v29, %v34_v28 }
  0x13   :  { %v147_v26 = vsel %vm86_vm0, %v937_v23, 0.0  ;;  %v156_v41 = vsel %vm86_vm0, %v967_v38, 0.0 }
  0x16   :  { %112 = vadd.xlane.f32.xlu2 %v111_v33  ;;  %109 = vadd.xlane.f32.xlu1 %v108_v37  ;;  %v144_v33 = vsel %vm86_vm0, %v941_v25, 0.0  ;;  %v58_v37 = vld [vmem:[%s1526_s0 + $0xb0] sm:$0xff] }
  0x17   :  { %v971_v40 = vadd.f32 %v58_v37, %v33_v36 }
  0x18   :  { %106 = vadd.xlane.f32.xlu0 %v105_v34  ;;  %v32_v34 = vld [vmem:[%s1527_s1 + $0xa8] sm:$0xff] }
  0x19   :  { %v969_v39 = vadd.f32 %v57_v35, %v32_v34 }
  0x1e   :  { %121 = vadd.xlane.f32.xlu2 %v120_v45  ;;  %118 = vadd.xlane.f32.xlu1 %v117_v49  ;;  %v150_v45 = vsel %vm86_vm0, %v969_v39, 0.0 }
  0x20   :  { %115 = vadd.xlane.f32.xlu0 %v114_v46  ;;  %v153_v46 = vsel %vm86_vm0, %v971_v40, 0.0 }
  0x26   :  { %130 = vadd.xlane.f32.xlu2 %v129_v60  ;;  %127 = vadd.xlane.f32.xlu1 %v126_v0 }
  0x28   :  { %124 = vadd.xlane.f32.xlu0 %v123_v61 }
  0x2e   :  { %139 = vadd.xlane.f32.xlu2 %v138_v11  ;;  %136 = vadd.xlane.f32.xlu1 %v135_v15 }
  0x30   :  { %133 = vadd.xlane.f32.xlu0 %v132_v12 }
  0x36   :  { %148 = vadd.xlane.f32.xlu2 %v147_v26  ;;  %145 = vadd.xlane.f32.xlu1 %v144_v33 }
  0x38   :  { %142 = vadd.xlane.f32.xlu0 %v141_v27 }
  0x3e   :  { %157 = vadd.xlane.f32.xlu2 %v156_v41  ;;  %154 = vadd.xlane.f32.xlu1 %v153_v46 }
  0x40   :  { %151 = vadd.xlane.f32.xlu0 %v150_v45 }
  0x48   :  { %160 = vadd.xlane.f32.xlu0 %v159_v47 }
  0x79   :  { %v101_v48 = vpop.xlane.xlu2 %100  ;;  %v95_v49 = vpop.xlane.xlu1 %94 }
  0x7a   :  { %v164_v51 = vmul.f32 0.041666668, %v95_v49  ;;  %v166_v12 = vmul.f32 0.041666668, %v101_v48 }
  0x7b   :  { %v89_v50 = vpop.xlane.xlu0 %88 }
  0x7c   :  { %v162_v52 = vmul.f32 0.041666668, %v89_v50  ;;  %v982_v53 = vsub.f32 %v751_v7, %v164_v51 }
  0x7e   :  { %v985_v55 = vsub.f32 %v753_v8, %v162_v52  ;;  %v214_v58 = vmul.f32 %v982_v53, %v982_v53 }
  0x80   :  { %v212_v60 = vmul.f32 %v985_v55, %v985_v55  ;;  %v243_v62 = vsel %vm86_vm0, %v214_v58, 0.0 }
  0x81   :  { %v104_v61 = vpop.xlane.xlu2 %103  ;;  %v98_v1 = vpop.xlane.xlu1 %97  ;;  %244 = vadd.xlane.f32.xlu0 %v243_v62 }
  0x82   :  { %v237_v63 = vsel %vm86_vm0, %v212_v60, 0.0  ;;  %v167_v0 = vmul.f32 0.041666668, %v104_v61  ;;  %v165_v2 = vmul.f32 0.041666668, %v98_v1 }
  0x83   :  { %238 = vadd.xlane.f32.xlu1 %v237_v63  ;;  %v92_v7 = vpop.xlane.xlu0 %91 }
  0x84   :  { %v163_v4 = vmul.f32 0.041666668, %v92_v7  ;;  %v994_v8 = vsub.f32 %v779_v18, %v167_v0  ;;  %v997_v5 = vsub.f32 %v781_v19, %v165_v2 }
  0x86   :  { %v1000_v11 = vsub.f32 %v783_v20, %v163_v4  ;;  %v217_v13 = vmul.f32 %v994_v8, %v994_v8  ;;  %v215_v14 = vmul.f32 %v997_v5, %v997_v5  ;;  %v1012_v20 = vsub.f32 %v740_v3, %v166_v12 }
  0x88   :  { %v213_v15 = vmul.f32 %v1000_v11, %v1000_v11  ;;  %v252_v16 = vsel %vm86_vm0, %v217_v13, 0.0  ;;  %v246_v17 = vsel %vm86_vm0, %v215_v14, 0.0  ;;  %v216_v3 = vmul.f32 %v1012_v20, %v1012_v20 }
  0x89   :  { %v113_v18 = vpop.xlane.xlu2 %112  ;;  %253 = vadd.xlane.f32.xlu0 %v252_v16  ;;  %v110_v26 = vpop.xlane.xlu1 %109 }
  0x8a   :  { %v240_v19 = vsel %vm86_vm0, %v213_v15, 0.0  ;;  %v170_v21 = vmul.f32 0.041666668, %v113_v18  ;;  %v169_v29 = vmul.f32 0.041666668, %v110_v26 }
  0x8b   :  { %247 = vadd.xlane.f32.xlu1 %v246_v17  ;;  %v107_v22 = vpop.xlane.xlu0 %106  ;;  %241 = vadd.xlane.f32.xlu2 %v240_v19 }
  0x8c   :  { %v168_v27 = vmul.f32 0.041666668, %v107_v22  ;;  %v1015_v28 = vsub.f32 %v809_v30, %v170_v21  ;;  %v1027_v36 = vsub.f32 %v813_v32, %v169_v29 }
  0x8e   :  { %v1018_v33 = vsub.f32 %v811_v31, %v168_v27  ;;  %v220_v34 = vmul.f32 %v1015_v28, %v1015_v28  ;;  %v249_v31 = vsel %vm86_vm0, %v216_v3, 0.0  ;;  %v219_v32 = vmul.f32 %v1027_v36, %v1027_v36 }
  0x90   :  { %v218_v35 = vmul.f32 %v1018_v33, %v1018_v33  ;;  %v261_v37 = vsel %vm86_vm0, %v220_v34, 0.0 }
  0x91   :  { %v122_v30 = vpop.xlane.xlu2 %121  ;;  %262 = vadd.xlane.f32.xlu0 %v261_v37  ;;  %v119_v47 = vpop.xlane.xlu1 %118 }
  0x92   :  { %v255_v41 = vsel %vm86_vm0, %v218_v35, 0.0  ;;  %v173_v45 = vmul.f32 0.041666668, %v122_v30  ;;  %v172_v50 = vmul.f32 0.041666668, %v119_v47 }
  0x93   :  { %256 = vadd.xlane.f32.xlu1 %v255_v41  ;;  %v116_v46 = vpop.xlane.xlu0 %115  ;;  %250 = vadd.xlane.f32.xlu2 %v249_v31 }
  0x94   :  { %v171_v48 = vmul.f32 0.041666668, %v116_v46  ;;  %v1033_v49 = vsub.f32 %v839_v42, %v173_v45  ;;  %v1045_v60 = vsub.f32 %v843_v44, %v172_v50  ;;  %v258_v42 = vsel %vm86_vm0, %v219_v32, 0.0 }
  0x96   :  { %v1038_v51 = vsub.f32 %v841_v43, %v171_v48  ;;  %v223_v52 = vmul.f32 %v1033_v49, %v1033_v49  ;;  %v222_v44 = vmul.f32 %v1045_v60, %v1045_v60 }
  0x98   :  { %v221_v58 = vmul.f32 %v1038_v51, %v1038_v51  ;;  %v270_v61 = vsel %vm86_vm0, %v223_v52, 0.0 }
  0x99   :  { %v131_v62 = vpop.xlane.xlu2 %130  ;;  %271 = vadd.xlane.f32.xlu0 %v270_v61  ;;  %v128_v1 = vpop.xlane.xlu1 %127 }
  0x9a   :  { %v264_v63 = vsel %vm86_vm0, %v221_v58, 0.0  ;;  %v176_v0 = vmul.f32 0.041666668, %v131_v62  ;;  %v175_v4 = vmul.f32 0.041666668, %v128_v1 }
  0x9b   :  { %265 = vadd.xlane.f32.xlu1 %v264_v63  ;;  %v125_v43 = vpop.xlane.xlu0 %124  ;;  %259 = vadd.xlane.f32.xlu2 %v258_v42 }
  0x9c   :  { %v174_v7 = vmul.f32 0.041666668, %v125_v43  ;;  %v1051_v2 = vsub.f32 %v869_v54, %v176_v0  ;;  %v1063_v15 = vsub.f32 %v876_v57, %v175_v4  ;;  %v267_v54 = vsel %vm86_vm0, %v222_v44, 0.0 }
  0x9e   :  { %v1056_v12 = vsub.f32 %v874_v56, %v174_v7  ;;  %v226_v13 = vmul.f32 %v1051_v2, %v1051_v2  ;;  %v225_v57 = vmul.f32 %v1063_v15, %v1063_v15 }
  0xa0   :  { %v224_v14 = vmul.f32 %v1056_v12, %v1056_v12  ;;  %v279_v16 = vsel %vm86_vm0, %v226_v13, 0.0 }
  0xa1   :  { %v140_v18 = vpop.xlane.xlu2 %139  ;;  %280 = vadd.xlane.f32.xlu0 %v279_v16  ;;  %v137_v21 = vpop.xlane.xlu1 %136 }
  0xa2   :  { %v273_v17 = vsel %vm86_vm0, %v224_v14, 0.0  ;;  %v179_v19 = vmul.f32 0.041666668, %v140_v18  ;;  %v178_v27 = vmul.f32 0.041666668, %v137_v21 }
  0xa3   :  { %274 = vadd.xlane.f32.xlu1 %v273_v17  ;;  %v134_v56 = vpop.xlane.xlu0 %133  ;;  %268 = vadd.xlane.f32.xlu2 %v267_v54 }
  0xa4   :  { %v177_v22 = vmul.f32 0.041666668, %v134_v56  ;;  %v1069_v26 = vsub.f32 %v907_v6, %v179_v19  ;;  %v1081_v35 = vsub.f32 %v911_v10, %v178_v27  ;;  %v276_v6 = vsel %vm86_vm0, %v225_v57, 0.0 }
  0xa6   :  { %v1074_v29 = vsub.f32 %v909_v9, %v177_v22  ;;  %v229_v34 = vmul.f32 %v1069_v26, %v1069_v26  ;;  %v228_v10 = vmul.f32 %v1081_v35, %v1081_v35 }
  0xa8   :  { %v227_v3 = vmul.f32 %v1074_v29, %v1074_v29  ;;  %v288_v37 = vsel %vm86_vm0, %v229_v34, 0.0 }
  0xa9   :  { %v149_v30 = vpop.xlane.xlu2 %148  ;;  %289 = vadd.xlane.f32.xlu0 %v288_v37  ;;  %v146_v31 = vpop.xlane.xlu1 %145 }
  0xaa   :  { %v282_v41 = vsel %vm86_vm0, %v227_v3, 0.0  ;;  %v182_v45 = vmul.f32 0.041666668, %v149_v30  ;;  %v181_v48 = vmul.f32 0.041666668, %v146_v31 }
  0xab   :  { %283 = vadd.xlane.f32.xlu1 %v282_v41  ;;  %v143_v9 = vpop.xlane.xlu0 %142  ;;  %277 = vadd.xlane.f32.xlu2 %v276_v6 }
  0xac   :  { %v180_v46 = vmul.f32 0.041666668, %v143_v9  ;;  %v1087_v47 = vsub.f32 %v937_v23, %v182_v45  ;;  %v1099_v58 = vsub.f32 %v941_v25, %v181_v48  ;;  %v285_v23 = vsel %vm86_vm0, %v228_v10, 0.0 }
  0xae   :  { %v1092_v50 = vsub.f32 %v939_v24, %v180_v46  ;;  %v232_v32 = vmul.f32 %v1087_v47, %v1087_v47  ;;  %v231_v25 = vmul.f32 %v1099_v58, %v1099_v58 }
  0xb0   :  { %v230_v52 = vmul.f32 %v1092_v50, %v1092_v50  ;;  %v297_v61 = vsel %vm86_vm0, %v232_v32, 0.0 }
  0xb1   :  { %v158_v42 = vpop.xlane.xlu2 %157  ;;  %298 = vadd.xlane.f32.xlu0 %v297_v61  ;;  %v155_v0 = vpop.xlane.xlu1 %154 }
  0xb2   :  { %v291_v62 = vsel %vm86_vm0, %v230_v52, 0.0  ;;  %v185_v63 = vmul.f32 0.041666668, %v158_v42  ;;  %v184_v7 = vmul.f32 0.041666668, %v155_v0 }
  0xb3   :  { %292 = vadd.xlane.f32.xlu1 %v291_v62  ;;  %v152_v24 = vpop.xlane.xlu0 %151  ;;  %286 = vadd.xlane.f32.xlu2 %v285_v23 }
  0xb4   :  { %v183_v43 = vmul.f32 0.041666668, %v152_v24  ;;  %v1105_v1 = vsub.f32 %v967_v38, %v185_v63  ;;  %v1117_v14 = vsub.f32 %v971_v40, %v184_v7  ;;  %v294_v38 = vsel %vm86_vm0, %v231_v25, 0.0 }
  0xb6   :  { %v1110_v4 = vsub.f32 %v969_v39, %v183_v43  ;;  %v235_v44 = vmul.f32 %v1105_v1, %v1105_v1  ;;  %v234_v17 = vmul.f32 %v1117_v14, %v1117_v14 }
  0xb8   :  { %v233_v13 = vmul.f32 %v1110_v4, %v1110_v4  ;;  %v306_v16 = vsel %vm86_vm0, %v235_v44, 0.0  ;;  %v303_v56 = vsel %vm86_vm0, %v234_v17, 0.0 }
  0xb9   :  { %307 = vadd.xlane.f32.xlu0 %v306_v16 }
  0xba   :  { %v300_v54 = vsel %vm86_vm0, %v233_v13, 0.0 }
  0xbb   :  { %301 = vadd.xlane.f32.xlu1 %v300_v54  ;;  %v161_v18 = vpop.xlane.xlu0 %160  ;;  %295 = vadd.xlane.f32.xlu2 %v294_v38 }
  0xbc   :  { %v186_v39 = vmul.f32 0.041666668, %v161_v18 }
  0xbe   :  { %v1125_v19 = vsub.f32 %v881_v59, %v186_v39 }
  0xc0   :  { %v236_v40 = vmul.f32 %v1125_v19, %v1125_v19 }
  0xc2   :  { %v309_v21 = vsel %vm86_vm0, %v236_v40, 0.0 }
  0xc3   :  { %310 = vadd.xlane.f32.xlu1 %v309_v21  ;;  %304 = vadd.xlane.f32.xlu2 %v303_v56 }
  0xf4   :  { %v245_v27 = vpop.xlane.xlu0 %244 }
  0xf5   :  { %v314_v34 = vmul.f32 0.04347826, %v245_v27 }
  0xf6   :  { %v239_v22 = vpop.xlane.xlu1 %238 }
  0xf7   :  { %v312_v57 = vmul.f32 0.04347826, %v239_v22  ;;  %v339_v37 = vadd.f32 1e-05, %v314_v34 }
  0xf9   :  { %v337_v3 = vadd.f32 1e-05, %v312_v57  ;;  %vm388_vm4 = vweird.f32 %v339_v37 }
  0xfb   :  { %666 = vrsqrt.f32 %v337_v3  ;;  %vm368_vm2 = vweird.f32 %v337_v3 }
  0xfc   :  { %668 = vrsqrt.f32 %v339_v37  ;;  %v254_v59 = vpop.xlane.xlu0 %253 }
  0xfd   :  { %v317_v45 = vmul.f32 0.04347826, %v254_v59 }
  0xfe   :  { %v248_v6 = vpop.xlane.xlu1 %247  ;;  %v242_v41 = vpop.xlane.xlu2 %241 }
  0xff   :  { %v315_v30 = vmul.f32 0.04347826, %v248_v6  ;;  %v313_v9 = vmul.f32 0.04347826, %v242_v41  ;;  %v1133_v48 = vadd.f32 1e-05, %v317_v45 }
 0x101   :  { %v667_v31 = vpop.eup %666  ;;  %v1131_v46 = vadd.f32 1e-05, %v315_v30  ;;  %v1135_v52 = vadd.f32 1e-05, %v313_v9  ;;  %vm418_vm8 = vweird.f32 %v1133_v48 }
 0x102   :  { %v669_v10 = vpop.eup %668  ;;  %v363_v32 = vmul.f32 %v667_v31, %v337_v3  ;;  %vm369_vm1 = vweird.f32 %v667_v31 }
 0x103   :  { %v383_v61 = vmul.f32 %v669_v10, %v339_v37  ;;  %670 = vrsqrt.f32 %v1131_v46  ;;  %vm389_vm3 = vweird.f32 %v669_v10  ;;  %vm370_vm5 = vmor %vm368_vm2, %vm369_vm1  ;;  %vm398_vm7 = vweird.f32 %v1131_v46 }
 0x104   :  { %v364_v23 = vmul.f32 %v667_v31, %v363_v32  ;;  %672 = vrsqrt.f32 %v1135_v52  ;;  %v263_v24 = vpop.xlane.xlu0 %262  ;;  %vm390_vm6 = vmor %vm388_vm4, %vm389_vm3  ;;  %vm378_vm13 = vweird.f32 %v1135_v52 }
 0x105   :  { %v384_v42 = vmul.f32 %v669_v10, %v383_v61  ;;  %674 = vrsqrt.f32 %v1133_v48  ;;  %v320_v25 = vmul.f32 0.04347826, %v263_v24 }
 0x106   :  { %v365_v62 = vmul.f32 0.5, %v364_v23  ;;  %v257_v63 = vpop.xlane.xlu1 %256  ;;  %v251_v43 = vpop.xlane.xlu2 %250 }
 0x107   :  { %v385_v0 = vmul.f32 0.5, %v384_v42  ;;  %v318_v7 = vmul.f32 0.04347826, %v257_v63  ;;  %v316_v13 = vmul.f32 0.04347826, %v251_v43 }
 0x108   :  { %v366_v44 = vsub.f32 1.5, %v365_v62  ;;  %v1155_v27 = vadd.f32 1e-05, %v320_v25 }
 0x109   :  { %v1140_v16 = vpop.eup %670  ;;  %v386_v38 = vsub.f32 1.5, %v385_v0  ;;  %v1142_v54 = vadd.f32 1e-05, %v318_v7  ;;  %v1148_v40 = vadd.f32 1e-05, %v316_v13 }
 0x10a   :  { %v1144_v18 = vpop.eup %672  ;;  %v367_v39 = vmul.f32 %v667_v31, %v366_v44  ;;  %v393_v17 = vmul.f32 %v1140_v16, %v1131_v46  ;;  %vm399_vm9 = vweird.f32 %v1140_v16 }
 0x10b   :  { %v1150_v56 = vpop.eup %674  ;;  %v387_v21 = vmul.f32 %v669_v10, %v386_v38  ;;  %v373_v22 = vmul.f32 %v1144_v18, %v1135_v52  ;;  %676 = vrsqrt.f32 %v1142_v54  ;;  %vm379_vm10 = vweird.f32 %v1144_v18  ;;  %vm400_vm12 = vmor %vm398_vm7, %vm399_vm9 }
 0x10c   :  { %v371_v57 = vsel %vm370_vm5, %v667_v31, %v367_v39  ;;  %v394_v34 = vmul.f32 %v1140_v16, %v393_v17  ;;  %v413_v3 = vmul.f32 %v1150_v56, %v1133_v48  ;;  %678 = vrsqrt.f32 %v1148_v40  ;;  %v272_v31 = vpop.xlane.xlu0 %271  ;;  %vm380_vm14 = vmor %vm378_vm13, %vm379_vm10 }
 0x10d   :  { %v612_v37 = vmul.f32 %v371_v57, %v985_v55  ;;  %v391_v6 = vsel %vm390_vm6, %v669_v10, %v387_v21  ;;  %v374_v59 = vmul.f32 %v1144_v18, %v373_v22  ;;  %680 = vrsqrt.f32 %v1155_v27 }
 0x10e   :  { %v614_v30 = vmul.f32 %v391_v6, %v982_v53  ;;  %v395_v41 = vmul.f32 0.5, %v394_v34  ;;  %v414_v45 = vmul.f32 %v1150_v56, %v413_v3  ;;  %v266_v9 = vpop.xlane.xlu1 %265  ;;  %v260_v10 = vpop.xlane.xlu2 %259  ;;  %v323_v63 = vmul.f32 0.04347826, %v272_v31 }
 0x10f   :  { %637 = vst.msk [vmem:[%s1528_s2] sm:$0xff] %vm86_vm0, %v612_v37  ;;  %v375_v55 = vmul.f32 0.5, %v374_v59  ;;  %v319_v61 = vmul.f32 0.04347826, %v260_v10  ;;  %v321_v62 = vmul.f32 0.04347826, %v266_v9  ;;  %vm419_vm11 = vweird.f32 %v1150_v56 }
 0x110   :  { %639 = vst.msk [vmem:[%s1528_s2 + $0x10] sm:$0xff] %vm86_vm0, %v614_v30  ;;  %v396_v53 = vsub.f32 1.5, %v395_v41  ;;  %v415_v32 = vmul.f32 0.5, %v414_v45  ;;  %v1199_v21 = vadd.f32 1e-05, %v323_v63  ;;  %vm420_vm15 = vmor %vm418_vm8, %vm419_vm11  ;;  %vm408_vm1 = vweird.f32 %v1148_v40 }
 0x111   :  { %v1178_v23 = vpop.eup %676  ;;  %v376_v42 = vsub.f32 1.5, %v375_v55  ;;  %v1191_v44 = vadd.f32 1e-05, %v319_v61  ;;  %v1193_v13 = vadd.f32 1e-05, %v321_v62  ;;  %vm428_vm4 = vweird.f32 %v1142_v54 }
 0x112   :  { %v397_v24 = vmul.f32 %v1140_v16, %v396_v53  ;;  %v416_v0 = vsub.f32 1.5, %v415_v32  ;;  %v423_v43 = vmul.f32 %v1178_v23, %v1142_v54  ;;  %v1185_v7 = vpop.eup %678  ;;  %vm429_vm2 = vweird.f32 %v1178_v23 }
 0x113   :  { %v377_v25 = vmul.f32 %v1144_v18, %v376_v42  ;;  %v403_v17 = vmul.f32 %v1185_v7, %v1148_v40  ;;  %v1201_v46 = vpop.eup %680  ;;  %682 = vrsqrt.f32 %v1191_v44  ;;  %vm409_vm3 = vweird.f32 %v1185_v7  ;;  %vm430_vm6 = vmor %vm428_vm4, %vm429_vm2 }
 0x114   :  { %v401_v38 = vsel %vm400_vm12, %v1140_v16, %v397_v24  ;;  %v417_v39 = vmul.f32 %v1150_v56, %v416_v0  ;;  %v424_v16 = vmul.f32 %v1178_v23, %v423_v43  ;;  %v281_v59 = vpop.xlane.xlu0 %280  ;;  %684 = vrsqrt.f32 %v1193_v13  ;;  %vm410_vm8 = vmor %vm408_vm1, %vm409_vm3 }
 0x115   :  { %v615_v22 = vmul.f32 %v401_v38, %v997_v5  ;;  %v381_v52 = vsel %vm380_vm14, %v1144_v18, %v377_v25  ;;  %v404_v3 = vmul.f32 %v1185_v7, %v403_v17  ;;  %v443_v5 = vmul.f32 %v1201_v46, %v1155_v27 }
 0x116   :  { %v613_v57 = vmul.f32 %v381_v52, %v1000_v11  ;;  %v421_v34 = vsel %vm420_vm15, %v1150_v56, %v417_v39  ;;  %v275_v37 = vpop.xlane.xlu1 %274  ;;  %v425_v18 = vmul.f32 0.5, %v424_v16  ;;  %v269_v6 = vpop.xlane.xlu2 %268  ;;  %686 = vrsqrt.f32 %v1199_v21 }
 0x117   :  { %640 = vst.msk [vmem:[%s1528_s2 + $0x18] sm:$0xff] %vm86_vm0, %v615_v22  ;;  %v617_v48 = vmul.f32 %v421_v34, %v994_v8  ;;  %v405_v11 = vmul.f32 0.5, %v404_v3  ;;  %v444_v56 = vmul.f32 %v1201_v46, %v443_v5  ;;  %v322_v30 = vmul.f32 0.04347826, %v269_v6 }
 0x118   :  { %638 = vst.msk [vmem:[%s1528_s2 + $0x8] sm:$0xff] %vm86_vm0, %v613_v57  ;;  %v426_v8 = vsub.f32 1.5, %v425_v18  ;;  %v324_v9 = vmul.f32 0.04347826, %v275_v37  ;;  %vm448_vm5 = vweird.f32 %v1155_v27  ;;  %vm449_vm7 = vweird.f32 %v1201_v46 }
 0x119   :  { %642 = vst.msk [vmem:[%s1528_s2 + $0x28] sm:$0xff] %vm86_vm0, %v617_v48  ;;  %v406_v41 = vsub.f32 1.5, %v405_v11  ;;  %v445_v45 = vmul.f32 0.5, %v444_v56  ;;  %v1235_v31 = vpop.eup %682  ;;  %v1240_v10 = vadd.f32 1e-05, %v322_v30  ;;  %vm450_vm9 = vmor %vm448_vm5, %vm449_vm7  ;;  %vm438_vm10 = vweird.f32 %v1191_v44 }
 0x11a   :  { %v427_v55 = vmul.f32 %v1178_v23, %v426_v8  ;;  %v433_v61 = vmul.f32 %v1235_v31, %v1191_v44  ;;  %v1250_v54 = vadd.f32 1e-05, %v324_v9  ;;  %v326_v62 = vmul.f32 0.04347826, %v281_v59  ;;  %v1252_v63 = vpop.eup %684 }
 0x11b   :  { %v407_v53 = vmul.f32 %v1185_v7, %v406_v41  ;;  %v446_v32 = vsub.f32 1.5, %v445_v45  ;;  %688 = vrsqrt.f32 %v1240_v10  ;;  %v453_v39 = vmul.f32 %v1252_v63, %v1193_v13 }
 0x11c   :  { %v431_v42 = vsel %vm430_vm6, %v1178_v23, %v427_v55  ;;  %v434_v25 = vmul.f32 %v1235_v31, %v433_v61  ;;  %v1258_v40 = vpop.eup %686  ;;  %690 = vrsqrt.f32 %v1250_v54  ;;  %vm439_vm11 = vweird.f32 %v1235_v31 }
 0x11d   :  { %v411_v24 = vsel %vm410_vm8, %v1185_v7, %v407_v53  ;;  %v618_v0 = vmul.f32 %v431_v42, %v1018_v33  ;;  %v447_v43 = vmul.f32 %v1201_v46, %v446_v32  ;;  %v454_v22 = vmul.f32 %v1252_v63, %v453_v39  ;;  %vm440_vm14 = vmor %vm438_vm10, %vm439_vm11 }
 0x11e   :  { %v284_v38 = vpop.xlane.xlu1 %283  ;;  %v616_v23 = vmul.f32 %v411_v24, %v1012_v20  ;;  %v278_v33 = vpop.xlane.xlu2 %277  ;;  %v435_v17 = vmul.f32 0.5, %v434_v25  ;;  %v473_v20 = vmul.f32 %v1258_v40, %v1199_v21  ;;  %v1283_v52 = vadd.f32 1e-05, %v326_v62 }
 0x11f   :  { %643 = vst.msk [vmem:[%s1528_s2 + $0x30] sm:$0xff] %vm86_vm0, %v618_v0  ;;  %v451_v7 = vsel %vm450_vm9, %v1201_v46, %v447_v43  ;;  %v290_v46 = vpop.xlane.xlu0 %289  ;;  %v325_v34 = vmul.f32 0.04347826, %v278_v33  ;;  %v327_v3 = vmul.f32 0.04347826, %v284_v38  ;;  %vm459_vm12 = vweird.f32 %v1252_v63 }
 0x120   :  { %641 = vst.msk [vmem:[%s1528_s2 + $0x20] sm:$0xff] %vm86_vm0, %v616_v23  ;;  %v620_v27 = vmul.f32 %v451_v7, %v1015_v28  ;;  %v436_v16 = vsub.f32 1.5, %v435_v17  ;;  %v474_v57 = vmul.f32 %v1258_v40, %v473_v20  ;;  %v455_v28 = vmul.f32 0.5, %v454_v22 }
 0x121   :  { %v1286_v5 = vpop.eup %688  ;;  %vm478_vm13 = vweird.f32 %v1199_v21  ;;  %692 = vrsqrt.f32 %v1283_v52  ;;  %v329_v6 = vmul.f32 0.04347826, %v290_v46  ;;  %vm479_vm15 = vweird.f32 %v1258_v40 }
 0x122   :  { %645 = vst.msk [vmem:[%s1528_s2 + $0x40] sm:$0xff] %vm86_vm0, %v620_v27  ;;  %v437_v37 = vmul.f32 %v1235_v31, %v436_v16  ;;  %v475_v48 = vmul.f32 0.5, %v474_v57  ;;  %v463_v18 = vmul.f32 %v1286_v5, %v1240_v10  ;;  %v1298_v59 = vpop.eup %690  ;;  %v456_v11 = vsub.f32 1.5, %v455_v28  ;;  %vm480_vm3 = vmor %vm478_vm13, %vm479_vm15 }
 0x123   :  { %v1305_v56 = vadd.f32 1e-05, %v325_v34  ;;  %v1307_v8 = vadd.f32 1e-05, %v327_v3  ;;  %v483_v9 = vmul.f32 %v1298_v59, %v1250_v54  ;;  %vm458_vm1 = vweird.f32 %v1193_v13 }
 0x124   :  { %v441_v30 = vsel %vm440_vm14, %v1235_v31, %v437_v37  ;;  %v476_v41 = vsub.f32 1.5, %v475_v48  ;;  %v464_v45 = vmul.f32 %v1286_v5, %v463_v18  ;;  %v457_v44 = vmul.f32 %v1252_v63, %v456_v11  ;;  %vm460_vm2 = vmor %vm458_vm1, %vm459_vm12 }
 0x125   :  { %v619_v55 = vmul.f32 %v441_v30, %v1027_v36  ;;  %694 = vrsqrt.f32 %v1305_v56  ;;  %v484_v42 = vmul.f32 %v1298_v59, %v483_v9  ;;  %vm469_vm4 = vweird.f32 %v1286_v5 }
 0x126   :  { %v287_v53 = vpop.xlane.xlu2 %286  ;;  %v293_v32 = vpop.xlane.xlu1 %292  ;;  %v477_v31 = vmul.f32 %v1258_v40, %v476_v41  ;;  %v465_v61 = vmul.f32 0.5, %v464_v45  ;;  %v461_v36 = vsel %vm460_vm2, %v1252_v63, %v457_v44  ;;  %696 = vrsqrt.f32 %v1307_v8 }
 0x127   :  { %v1321_v62 = vpop.eup %692  ;;  %644 = vst.msk [vmem:[%s1528_s2 + $0x38] sm:$0xff] %vm86_vm0, %v619_v55  ;;  %v1334_v13 = vadd.f32 1e-05, %v329_v6  ;;  %v621_v24 = vmul.f32 %v461_v36, %v1038_v51  ;;  %v485_v25 = vmul.f32 0.5, %v484_v42  ;;  %vm468_vm5 = vweird.f32 %v1240_v10  ;;  %v299_v63 = vpop.xlane.xlu0 %298 }
 0x128   :  { %v481_v0 = vsel %vm480_vm3, %v1258_v40, %v477_v31  ;;  %v466_v43 = vsub.f32 1.5, %v465_v61  ;;  %v503_v21 = vmul.f32 %v1321_v62, %v1283_v52  ;;  %vm489_vm6 = vweird.f32 %v1298_v59  ;;  %vm470_vm7 = vmor %vm468_vm5, %vm469_vm4 }
 0x129   :  { %v623_v38 = vmul.f32 %v481_v0, %v1033_v49  ;;  %698 = vrsqrt.f32 %v1334_v13  ;;  %646 = vst.msk [vmem:[%s1528_s2 + $0x48] sm:$0xff] %vm86_vm0, %v621_v24  ;;  %v486_v40 = vsub.f32 1.5, %v485_v25  ;;  %v328_v23 = vmul.f32 0.04347826, %v287_v53 }
 0x12a   :  { %v467_v51 = vmul.f32 %v1286_v5, %v466_v43  ;;  %vm488_vm8 = vweird.f32 %v1250_v54  ;;  %v504_v10 = vmul.f32 %v1321_v62, %v503_v21  ;;  %vm508_vm9 = vweird.f32 %v1283_v52 }
 0x12b   :  { %v1349_v49 = vpop.eup %694  ;;  %648 = vst.msk [vmem:[%s1528_s2 + $0x58] sm:$0xff] %vm86_vm0, %v623_v38  ;;  %v330_v39 = vmul.f32 0.04347826, %v293_v32  ;;  %v487_v7 = vmul.f32 %v1298_v59, %v486_v40  ;;  %v332_v20 = vmul.f32 0.04347826, %v299_v63  ;;  %vm490_vm10 = vmor %vm488_vm8, %vm489_vm6  ;;  %vm498_vm11 = vweird.f32 %v1305_v56 }
 0x12c   :  { %v471_v33 = vsel %vm470_vm7, %v1286_v5, %v467_v51  ;;  %v493_v17 = vmul.f32 %v1349_v49, %v1305_v56  ;;  %v1364_v27 = vpop.eup %696  ;;  %v505_v54 = vmul.f32 0.5, %v504_v10  ;;  %v1369_v46 = vadd.f32 1e-05, %v328_v23 }
 0x12d   :  { %v622_v22 = vmul.f32 %v471_v33, %v1045_v60  ;;  %v1371_v16 = vadd.f32 1e-05, %v330_v39  ;;  %v491_v57 = vsel %vm490_vm10, %v1298_v59, %v487_v7  ;;  %v513_v3 = vmul.f32 %v1364_v27, %v1307_v8 }
 0x12e   :  { %v494_v34 = vmul.f32 %v1349_v49, %v493_v17  ;;  %v296_v5 = vpop.xlane.xlu2 %295  ;;  %v624_v60 = vmul.f32 %v491_v57, %v1056_v12  ;;  %v506_v37 = vsub.f32 1.5, %v505_v54  ;;  %vm509_vm12 = vweird.f32 %v1321_v62  ;;  %v302_v48 = vpop.xlane.xlu1 %301 }
 0x12f   :  { %v1378_v28 = vpop.eup %698  ;;  %647 = vst.msk [vmem:[%s1528_s2 + $0x50] sm:$0xff] %vm86_vm0, %v622_v22  ;;  %700 = vrsqrt.f32 %v1369_v46  ;;  %v514_v6 = vmul.f32 %v1364_v27, %v513_v3  ;;  %vm518_vm13 = vweird.f32 %v1307_v8  ;;  %vm499_vm14 = vweird.f32 %v1349_v49  ;;  %vm510_vm15 = vmor %vm508_vm9, %vm509_vm12  ;;  %v308_v52 = vpop.xlane.xlu0 %307 }
 0x130   :  { %v495_v18 = vmul.f32 0.5, %v494_v34  ;;  %v533_v59 = vmul.f32 %v1378_v28, %v1334_v13  ;;  %649 = vst.msk [vmem:[%s1528_s2 + $0x60] sm:$0xff] %vm86_vm0, %v624_v60  ;;  %v507_v12 = vmul.f32 %v1321_v62, %v506_v37  ;;  %702 = vrsqrt.f32 %v1371_v16  ;;  %vm500_vm2 = vmor %vm498_vm11, %vm499_vm14 }
 0x131   :  { %v1398_v11 = vadd.f32 1e-05, %v332_v20  ;;  %v515_v41 = vmul.f32 0.5, %v514_v6  ;;  %v331_v9 = vmul.f32 0.04347826, %v296_v5  ;;  %vm519_vm1 = vweird.f32 %v1364_v27 }
 0x132   :  { %v496_v30 = vsub.f32 1.5, %v495_v18  ;;  %v534_v45 = vmul.f32 %v1378_v28, %v533_v59  ;;  %v511_v55 = vsel %vm510_vm15, %v1321_v62, %v507_v12  ;;  %v333_v44 = vmul.f32 0.04347826, %v302_v48  ;;  %vm520_vm5 = vmor %vm518_vm13, %vm519_vm1 }
 0x133   :  { %704 = vrsqrt.f32 %v1398_v11  ;;  %v626_v53 = vmul.f32 %v511_v55, %v1051_v2  ;;  %v516_v31 = vsub.f32 1.5, %v515_v41  ;;  %vm538_vm3 = vweird.f32 %v1334_v13 }
 0x134   :  { %v497_v32 = vmul.f32 %v1349_v49, %v496_v30  ;;  %v535_v61 = vmul.f32 0.5, %v534_v45  ;;  %vm539_vm4 = vweird.f32 %v1378_v28  ;;  %v1414_v62 = vadd.f32 1e-05, %v331_v9 }
 0x135   :  { %v701_v42 = vpop.eup %700  ;;  %v1416_v36 = vadd.f32 1e-05, %v333_v44  ;;  %651 = vst.msk [vmem:[%s1528_s2 + $0x70] sm:$0xff] %vm86_vm0, %v626_v53  ;;  %v517_v24 = vmul.f32 %v1364_v27, %v516_v31  ;;  %v335_v38 = vmul.f32 0.04347826, %v308_v52  ;;  %vm540_vm6 = vmor %vm538_vm3, %vm539_vm4  ;;  %vm528_vm7 = vweird.f32 %v1369_v46 }
 0x136   :  { %v501_v2 = vsel %vm500_vm2, %v1349_v49, %v497_v32  ;;  %v536_v0 = vsub.f32 1.5, %v535_v61  ;;  %v523_v56 = vmul.f32 %v701_v42, %v1369_v46  ;;  %v703_v43 = vpop.eup %702  ;;  %706 = vrsqrt.f32 %v1414_v62  ;;  %v305_v23 = vpop.xlane.xlu2 %304 }
 0x137   :  { %v625_v25 = vmul.f32 %v501_v2, %v1063_v15  ;;  %v521_v21 = vsel %vm520_vm5, %v1364_v27, %v517_v24  ;;  %v543_v40 = vmul.f32 %v703_v43, %v1371_v16  ;;  %708 = vrsqrt.f32 %v1416_v36  ;;  %v311_v8 = vpop.xlane.xlu1 %310 }
 0x138   :  { %v537_v63 = vmul.f32 %v1378_v28, %v536_v0  ;;  %v524_v51 = vmul.f32 %v701_v42, %v523_v56  ;;  %v627_v15 = vmul.f32 %v521_v21, %v1074_v29  ;;  %vm529_vm8 = vweird.f32 %v701_v42 }
 0x139   :  { %v705_v49 = vpop.eup %704  ;;  %650 = vst.msk [vmem:[%s1528_s2 + $0x68] sm:$0xff] %vm86_vm0, %v625_v25  ;;  %v544_v33 = vmul.f32 %v703_v43, %v543_v40  ;;  %v1452_v13 = vadd.f32 1e-05, %v335_v38  ;;  %v334_v17 = vmul.f32 0.04347826, %v305_v23  ;;  %vm548_vm9 = vweird.f32 %v1371_v16  ;;  %vm530_vm11 = vmor %vm528_vm7, %vm529_vm8 }
 0x13a   :  { %v541_v10 = vsel %vm540_vm6, %v1378_v28, %v537_v63  ;;  %v525_v39 = vmul.f32 0.5, %v524_v51  ;;  %v563_v7 = vmul.f32 %v705_v49, %v1398_v11  ;;  %652 = vst.msk [vmem:[%s1528_s2 + $0x78] sm:$0xff] %vm86_vm0, %v627_v15  ;;  %v336_v54 = vmul.f32 0.04347826, %v311_v8 }
 0x13b   :  { %v629_v29 = vmul.f32 %v541_v10, %v1069_v26  ;;  %v545_v27 = vmul.f32 0.5, %v544_v33  ;;  %vm549_vm10 = vweird.f32 %v703_v43  ;;  %710 = vrsqrt.f32 %v1452_v13 }
 0x13c   :  { %v526_v20 = vsub.f32 1.5, %v525_v39  ;;  %v564_v22 = vmul.f32 %v705_v49, %v563_v7  ;;  %v707_v57 = vpop.eup %706  ;;  %v1460_v26 = vadd.f32 1e-05, %v334_v17  ;;  %vm568_vm12 = vweird.f32 %v1398_v11  ;;  %vm550_vm14 = vmor %vm548_vm9, %vm549_vm10 }
 0x13d   :  { %654 = vst.msk [vmem:[%s1528_s2 + $0x88] sm:$0xff] %vm86_vm0, %v629_v29  ;;  %v546_v3 = vsub.f32 1.5, %v545_v27  ;;  %v553_v28 = vmul.f32 %v707_v57, %v1414_v62  ;;  %v709_v60 = vpop.eup %708  ;;  %vm569_vm13 = vweird.f32 %v705_v49  ;;  %v1468_v37 = vadd.f32 1e-05, %v336_v54 }
 0x13e   :  { %v527_v34 = vmul.f32 %v701_v42, %v526_v20  ;;  %v565_v5 = vmul.f32 0.5, %v564_v22  ;;  %712 = vrsqrt.f32 %v1460_v26  ;;  %v573_v46 = vmul.f32 %v709_v60, %v1416_v36  ;;  %vm570_vm15 = vmor %vm568_vm12, %vm569_vm13 }
 0x13f   :  { %v547_v18 = vmul.f32 %v703_v43, %v546_v3  ;;  %v554_v59 = vmul.f32 %v707_v57, %v553_v28  ;;  %714 = vrsqrt.f32 %v1468_v37  ;;  %vm559_vm1 = vweird.f32 %v707_v57 }
 0x140   :  { %v531_v48 = vsel %vm530_vm11, %v701_v42, %v527_v34  ;;  %v566_v6 = vsub.f32 1.5, %v565_v5  ;;  %vm558_vm2 = vweird.f32 %v1414_v62  ;;  %vm579_vm4 = vweird.f32 %v709_v60 }
 0x141   :  { %v628_v12 = vmul.f32 %v531_v48, %v1081_v35  ;;  %v551_v30 = vsel %vm550_vm14, %v703_v43, %v547_v18  ;;  %v555_v45 = vmul.f32 0.5, %v554_v59  ;;  %v711_v9 = vpop.eup %710  ;;  %v574_v35 = vmul.f32 %v709_v60, %v573_v46  ;;  %vm560_vm3 = vmor %vm558_vm2, %vm559_vm1 }
 0x142   :  { %v567_v41 = vmul.f32 %v705_v49, %v566_v6  ;;  %v630_v55 = vmul.f32 %v551_v30, %v1092_v50  ;;  %v593_v53 = vmul.f32 %v711_v9, %v1452_v13  ;;  %vm578_vm5 = vweird.f32 %v1416_v36 }
 0x143   :  { %653 = vst.msk [vmem:[%s1528_s2 + $0x80] sm:$0xff] %vm86_vm0, %v628_v12  ;;  %v556_v44 = vsub.f32 1.5, %v555_v45  ;;  %v575_v61 = vmul.f32 0.5, %v574_v35  ;;  %vm598_vm6 = vweird.f32 %v1452_v13  ;;  %vm580_vm7 = vmor %vm578_vm5, %vm579_vm4  ;;  %vm599_vm8 = vweird.f32 %v711_v9 }
 0x144   :  { %v571_v16 = vsel %vm570_vm15, %v705_v49, %v567_v41  ;;  %v713_v32 = vpop.eup %712  ;;  %655 = vst.msk [vmem:[%s1528_s2 + $0x90] sm:$0xff] %vm86_vm0, %v630_v55  ;;  %v594_v11 = vmul.f32 %v711_v9, %v593_v53  ;;  %vm600_vm10 = vmor %vm598_vm6, %vm599_vm8  ;;  %vm588_vm11 = vweird.f32 %v1460_v26  ;;  %vm608_vm14 = vweird.f32 %v1468_v37 }
 0x145   :  { %v632_v31 = vmul.f32 %v571_v16, %v1087_v47  ;;  %v557_v50 = vmul.f32 %v707_v57, %v556_v44  ;;  %v583_v52 = vmul.f32 %v713_v32, %v1460_v26  ;;  %v715_v42 = vpop.eup %714  ;;  %v576_v2 = vsub.f32 1.5, %v575_v61 }
 0x146   :  { %v595_v0 = vmul.f32 0.5, %v594_v11  ;;  %v603_v47 = vmul.f32 %v715_v42, %v1468_v37  ;;  %vm589_vm9 = vweird.f32 %v713_v32  ;;  %vm609_vm12 = vweird.f32 %v715_v42 }
 0x147   :  { %657 = vst.msk [vmem:[%s1528_s2 + $0xa0] sm:$0xff] %vm86_vm0, %v632_v31  ;;  %v561_v24 = vsel %vm560_vm3, %v707_v57, %v557_v50  ;;  %v584_v56 = vmul.f32 %v713_v32, %v583_v52  ;;  %v577_v62 = vmul.f32 %v709_v60, %v576_v2  ;;  %vm590_vm13 = vmor %vm588_vm11, %vm589_vm9 }
 0x148   :  { %v631_v43 = vmul.f32 %v561_v24, %v1099_v58  ;;  %v596_v25 = vsub.f32 1.5, %v595_v0  ;;  %v604_v21 = vmul.f32 %v715_v42, %v603_v47  ;;  %vm610_vm15 = vmor %vm608_vm14, %vm609_vm12 }
 0x149   :  { %v585_v38 = vmul.f32 0.5, %v584_v56  ;;  %v581_v63 = vsel %vm580_vm7, %v709_v60, %v577_v62 }
 0x14a   :  { %656 = vst.msk [vmem:[%s1528_s2 + $0x98] sm:$0xff] %vm86_vm0, %v631_v43  ;;  %v633_v51 = vmul.f32 %v581_v63, %v1110_v4  ;;  %v597_v58 = vmul.f32 %v711_v9, %v596_v25  ;;  %v605_v23 = vmul.f32 0.5, %v604_v21 }
 0x14b   :  { %v586_v40 = vsub.f32 1.5, %v585_v38 }
 0x14c   :  { %658 = vst.msk [vmem:[%s1528_s2 + $0xa8] sm:$0xff] %vm86_vm0, %v633_v51  ;;  %v601_v36 = vsel %vm600_vm10, %v711_v9, %v597_v58  ;;  %v606_v15 = vsub.f32 1.5, %v605_v23 }
 0x14d   :  { %v587_v49 = vmul.f32 %v713_v32, %v586_v40  ;;  %v635_v8 = vmul.f32 %v601_v36, %v1105_v1 }
 0x14e   :  { %v607_v4 = vmul.f32 %v715_v42, %v606_v15 }
 0x14f   :  { %v591_v10 = vsel %vm590_vm13, %v713_v32, %v587_v49  ;;  %660 = vst.msk [vmem:[%s1528_s2 + $0xb8] sm:$0xff] %vm86_vm0, %v635_v8 }
 0x150   :  { %v634_v39 = vmul.f32 %v591_v10, %v1117_v14  ;;  %v611_v33 = vsel %vm610_vm15, %v715_v42, %v607_v4 }
 0x151   :  { %v636_v1 = vmul.f32 %v611_v33, %v1125_v19 }
 0x152   :  { %659 = vst.msk [vmem:[%s1528_s2 + $0xb0] sm:$0xff] %vm86_vm0, %v634_v39 }
 0x153   :  { %661 = vst.msk [vmem:[%s1528_s2 + $0xc0] sm:$0xff] %vm86_vm0, %v636_v1 }

</bundles_post_ra>
